<compile_context>
chip_gen: v5e
topology: v5e:2x2
jax: 0.10.0
libtpu: 0.0.40
codegen_flags: <defaults>
</compile_context>

<pallas_src>
import functools

import jax
import jax.numpy as jnp
from jax import lax
from jax.experimental import pallas as pl
from jax.experimental.pallas import tpu as pltpu


def _round_up(x, n):
    return -(-x // n) * n


# --------------------------------------------------------------------------
# Fused kernel: gather(ids) -> Linear1 (folded) -> SiLU -> Linear2.
# --------------------------------------------------------------------------
def _encoder_kernel(ids_ref, tw1_ref, b1_ref, w2_ref, b2_ref, o_ref):
    tile_m = ids_ref.shape[0]
    v_pad = tw1_ref.shape[0]

    # One-hot gather on the MXU (bf16 inputs, f32 accumulation -> exact rows).
    ids = ids_ref[...]                                              # (TM, 1) i32
    iota = lax.broadcasted_iota(jnp.int32, (tile_m, v_pad), 1)
    onehot = (ids == iota).astype(jnp.bfloat16)                     # (TM, V) 0/1

    # Fused embedding + first Linear: one-hot @ (table @ W1).
    h = jnp.dot(onehot, tw1_ref[...], preferred_element_type=jnp.float32)
    h = h + b1_ref[...]                                             # (1, D) bcast

    # SiLU(h) = h * sigmoid(h); exp + approx reciprocal use the EUP slot.
    h = h * pl.reciprocal(1.0 + jnp.exp(-h), approx=True)

    y = jnp.dot(h.astype(jnp.bfloat16), w2_ref[...],
                preferred_element_type=jnp.float32)
    o_ref[...] = (y + b2_ref[...]).astype(o_ref.dtype)


# --------------------------------------------------------------------------
# One-time host-side preparation (hoisted out of the forward path).
# --------------------------------------------------------------------------
def prepare_encoder_params(params, has_cofactor):
    embed = params["embed"].astype(jnp.float32)
    token_size, d_model = embed.shape

    if has_cofactor:
        table = jnp.concatenate(
            [embed, params["cof_embed"].astype(jnp.float32)], axis=0)
    else:
        table = embed

    v = table.shape[0]
    v_pad = _round_up(v, 8)
    if v_pad != v:
        table = jnp.pad(table, ((0, v_pad - v), (0, 0)))

    # Fold the embedding table into the first Linear (f32 compute, bf16 store).
    tw1 = (table @ params["w1"].astype(jnp.float32)).astype(jnp.bfloat16)

    prepared = {
        "tw1": tw1,                                                   # (V_pad, D)
        "w2": params["w2"].astype(jnp.bfloat16),                      # (D, D)
        "b1": params["b1"].reshape(1, d_model).astype(jnp.float32),
        "b2": params["b2"].reshape(1, d_model).astype(jnp.float32),
    }
    meta = {"token_size": token_size, "d_model": d_model, "v_pad": v_pad}
    return prepared, meta


def _vmem_limit_bytes(tm, d_model, v_pad, out_itemsize):
    ids_b = 2 * tm * 128 * 4                 # (TM, 1) i32, lane-padded, 2 bufs
    out_b = 2 * tm * d_model * out_itemsize  # double-buffered output blocks
    tw1_b = v_pad * d_model * 2              # resident, single-buffered
    w2_b = d_model * d_model * 2
    bias_b = 2 * 8 * d_model * 4
    need = ids_b + out_b + tw1_b + w2_b + bias_b
    # 1.5x headroom, clamped so it stays feasible on v7x (64 MiB physical).
    return max(16 << 20, min(64 << 20, int(need * 1.5) + (2 << 20)))


# --------------------------------------------------------------------------
# Enzyme_encoder forward.
# --------------------------------------------------------------------------
def enzyme_encoder_forward(prepared, meta, x_tokens, c_tokens=None, *,
                           tile_m=512, out_dtype=jnp.float32):
    """x_tokens: (B, L) int; c_tokens: optional (B, Lc) int. Returns (B, L+Lc, D)."""
    d_model = meta["d_model"]
    v_pad = meta["v_pad"]

    if c_tokens is not None:
        ids = jnp.concatenate(
            [x_tokens.astype(jnp.int32),
             c_tokens.astype(jnp.int32) + meta["token_size"]], axis=1)
    else:
        ids = x_tokens.astype(jnp.int32)

    b, l_tot = ids.shape
    m = b * l_tot
    ids = ids.reshape(m)

    # Row tiling: big tiles amortize per-grid-step overhead; for medium M use
    # two tiles so both v7x TensorCores get work; tiny M -> one block.
    if m > tile_m:
        tm = _round_up(max(tile_m, 8), 8)       # grid >= 2 steps automatically
    elif m >= 256:
        tm = _round_up(-(-m // 2), 8)           # split across 2 TCs on v7x
    else:
        tm = max(8, _round_up(m, 8))            # single block for tiny M
    m_pad = _round_up(m, tm)

    # Padded ids gather token 0 -> garbage rows in out[m:], sliced off below.
    # Only the int32 id column is padded, never an (M, D) activation slab.
    ids2d = jnp.pad(ids, (0, m_pad - m)).reshape(m_pad, 1)

    resident = dict(pipeline_mode=pl.Buffered(1))  # constant index_map: 1 buffer

    out = pl.pallas_call(
        _encoder_kernel,
        out_shape=jax.ShapeDtypeStruct((m_pad, d_model), out_dtype),
        grid_spec=pltpu.PrefetchScalarGridSpec(
            num_scalar_prefetch=0,
            grid=(m_pad // tm,),
            in_specs=[
                pl.BlockSpec((tm, 1), lambda i: (i, 0)),                        # ids
                pl.BlockSpec((v_pad, d_model), lambda i: (0, 0), **resident),   # table@W1
                pl.BlockSpec((1, d_model), lambda i: (0, 0), **resident),       # b1
                pl.BlockSpec((d_model, d_model), lambda i: (0, 0), **resident), # W2
                pl.BlockSpec((1, d_model), lambda i: (0, 0), **resident),       # b2
            ],
            out_specs=pl.BlockSpec((tm, d_model), lambda i: (i, 0)),
        ),
        compiler_params=pltpu.CompilerParams(
            dimension_semantics=("parallel",),
            vmem_limit_bytes=_vmem_limit_bytes(
                tm, d_model, v_pad, jnp.dtype(out_dtype).itemsize),
        ),
    )(ids2d, prepared["tw1"], prepared["b1"], prepared["w2"], prepared["b2"])

    if m_pad != m:
        out = out[:m]
    return out.reshape(b, l_tot, d_model)


# --------------------------------------------------------------------------
# Deterministic parameter init (synthetic; shapes mirror the PyTorch module).
# --------------------------------------------------------------------------
def init_params(key, token_size, d_model, cof_token_size=None):
    keys = jax.random.split(key, 6)
    params = {
        "embed": jax.random.normal(keys[0], (token_size, d_model), jnp.float32),
        # nn.Linear weight is (out, in); stored transposed (in, out) for x @ W.
        "w1": jax.random.normal(keys[1], (d_model, d_model), jnp.float32)
              * (1.0 / jnp.sqrt(d_model)),
        "b1": jax.random.normal(keys[2], (d_model,), jnp.float32) * 0.01,
        "w2": jax.random.normal(keys[3], (d_model, d_model), jnp.float32)
              * (1.0 / jnp.sqrt(d_model)),
        "b2": jax.random.normal(keys[4], (d_model,), jnp.float32) * 0.01,
    }
    if cof_token_size is not None:
        params["cof_embed"] = jax.random.normal(
            keys[5], (cof_token_size, d_model), jnp.float32)
    return params


# --------------------------------------------------------------------------
if __name__ == "__main__":
    # Small shapes consistent with the module: token_size=23, d_model=128,
    # batch=2, enzyme seq len=8, 2 cofactor tokens from a 5-token vocab.
    TOKEN_SIZE = 23
    D_MODEL = 128
    COF_TOKEN_SIZE = 5
    B, L, LC = 2, 8, 2

    key = jax.random.PRNGKey(0)
    k_param, k_x, k_c = jax.random.split(key, 3)

    params = init_params(k_param, TOKEN_SIZE, D_MODEL, COF_TOKEN_SIZE)
    x_tokens = jax.random.randint(k_x, (B, L), 0, TOKEN_SIZE, dtype=jnp.int32)
    c_tokens = jax.random.randint(k_c, (B, LC), 0, COF_TOKEN_SIZE, dtype=jnp.int32)

    # One-time host prep hoisted out of the forward path; forward jitted with
    # the prepared params captured by closure.
    prepared, meta = prepare_encoder_params(params, has_cofactor=True)
    fwd = jax.jit(functools.partial(enzyme_encoder_forward, prepared, meta))

    out = jax.block_until_ready(fwd(x_tokens, c_tokens))
    assert out.shape == (B, L + LC, D_MODEL), out.shape

    # ---- References -------------------------------------------------------
    x_emb = jnp.take(params["embed"], x_tokens, axis=0)
    c_emb = jnp.take(params["cof_embed"], c_tokens, axis=0)
    hcat = jnp.concatenate([x_emb, c_emb], axis=1)            # (B, L+LC, D)

    def bf(v):  # emulate the kernel's bf16 matmul inputs (f32 accumulation)
        return v.astype(jnp.bfloat16).astype(jnp.float32)

    # (a) numerics-matched reference: table@W1 folded in f32 then rounded to
    #     bf16 once; second matmul with bf16 inputs; exact sigmoid.
    h1 = bf(hcat @ params["w1"]) + params["b1"]
    s = h1 * jax.nn.sigmoid(h1)
    ref_bf = bf(s) @ bf(params["w2"]) + params["b2"]
    assert jnp.allclose(out, ref_bf, atol=2e-2, rtol=2e-2), \
        float(jnp.max(jnp.abs(out - ref_bf)))

    # (b) full-f32 module semantics (loose bound; bf16 matmul inputs in kernel).
    h1f = hcat @ params["w1"] + params["b1"]
    ref_f32 = (h1f * jax.nn.sigmoid(h1f)) @ params["w2"] + params["b2"]
    assert float(jnp.max(jnp.abs(out - ref_f32))) < 0.1

    print("KERNEL_OK")
</pallas_src>

<mosaic_0001>
module attributes {stable_mosaic.version = 11 : i64} {
  func.func @_encoder_kernel(%arg0: i32, %arg1: memref<24x1xi32, #tpu.memory_space<vmem>>, %arg2: memref<32x128xbf16, #tpu.memory_space<vmem>>, %arg3: memref<1x128xf32, #tpu.memory_space<vmem>>, %arg4: memref<128x128xbf16, #tpu.memory_space<vmem>>, %arg5: memref<1x128xf32, #tpu.memory_space<vmem>>, %arg6: memref<24x128xf32, #tpu.memory_space<vmem>>) attributes {dimension_semantics = [#tpu.dimension_semantics<parallel>], iteration_bounds = array<i64: 1>, scalar_prefetch = 0 : i64, scratch_operands = 0 : i64, tpu.core_type = #tpu.core_type<tc>, window_params = [{transform_indices = @transform_0, window_bounds = array<i64: 24, 1>}, {pipeline_mode = #tpu.pipeline_mode<synchronous>, transform_indices = @transform_1, window_bounds = array<i64: 32, 128>}, {pipeline_mode = #tpu.pipeline_mode<synchronous>, transform_indices = @transform_2, window_bounds = array<i64: 1, 128>}, {pipeline_mode = #tpu.pipeline_mode<synchronous>, transform_indices = @transform_3, window_bounds = array<i64: 128, 128>}, {pipeline_mode = #tpu.pipeline_mode<synchronous>, transform_indices = @transform_4, window_bounds = array<i64: 1, 128>}, {transform_indices = @transform_5, window_bounds = array<i64: 24, 128>}]} {
    %c0 = arith.constant 0 : index
    %c0_0 = arith.constant 0 : index
    %0 = vector.load %arg1[%c0, %c0_0] : memref<24x1xi32, #tpu.memory_space<vmem>>, vector<24x1xi32>
    %1 = tpu.iota {dimensions = array<i32: 1>} : vector<24x32xi32>
    %2 = vector.broadcast %0 : vector<24x1xi32> to vector<24x32xi32>
    %3 = arith.cmpi eq, %2, %1 : vector<24x32xi32>
    %4 = arith.extui %3 : vector<24x32xi1> to vector<24x32xi32>
    %5 = arith.sitofp %4 : vector<24x32xi32> to vector<24x32xf32>
    %6 = arith.truncf %5 : vector<24x32xf32> to vector<24x32xbf16>
    %c0_1 = arith.constant 0 : index
    %c0_2 = arith.constant 0 : index
    %7 = vector.load %arg2[%c0_1, %c0_2] : memref<32x128xbf16, #tpu.memory_space<vmem>>, vector<32x128xbf16>
    %cst = arith.constant dense<0.000000e+00> : vector<24x128xf32>
    %8 = tpu.matmul %6, %7, %cst {dimension_numbers = #tpu.dot_dimension_numbers<[1], [0], [0], [1], [0, 0, 1, 1], [], []>} : vector<24x32xbf16>, vector<32x128xbf16>, vector<24x128xf32> -> vector<24x128xf32>
    %c0_3 = arith.constant 0 : index
    %c0_4 = arith.constant 0 : index
    %9 = vector.load %arg3[%c0_3, %c0_4] : memref<1x128xf32, #tpu.memory_space<vmem>>, vector<1x128xf32>
    %10 = vector.broadcast %9 : vector<1x128xf32> to vector<24x128xf32>
    %11 = arith.addf %8, %10 : vector<24x128xf32>
    %cst_5 = arith.constant 0.000000e+00 : f32
    %12 = vector.broadcast %cst_5 : f32 to vector<24x128xf32>
    %13 = arith.subf %12, %11 : vector<24x128xf32>
    %14 = math.exp %13 : vector<24x128xf32>
    %cst_6 = arith.constant 1.000000e+00 : f32
    %15 = vector.broadcast %cst_6 : f32 to vector<24x128xf32>
    %16 = arith.addf %15, %14 : vector<24x128xf32>
    %17 = tpu.reciprocal %16 {approx = true} : vector<24x128xf32> -> vector<24x128xf32>
    %18 = arith.mulf %11, %17 : vector<24x128xf32>
    %19 = arith.truncf %18 : vector<24x128xf32> to vector<24x128xbf16>
    %c0_7 = arith.constant 0 : index
    %c0_8 = arith.constant 0 : index
    %20 = vector.load %arg4[%c0_7, %c0_8] : memref<128x128xbf16, #tpu.memory_space<vmem>>, vector<128x128xbf16>
    %cst_9 = arith.constant dense<0.000000e+00> : vector<24x128xf32>
    %21 = tpu.matmul %19, %20, %cst_9 {dimension_numbers = #tpu.dot_dimension_numbers<[1], [0], [0], [1], [0, 0, 1, 1], [], []>} : vector<24x128xbf16>, vector<128x128xbf16>, vector<24x128xf32> -> vector<24x128xf32>
    %c0_10 = arith.constant 0 : index
    %c0_11 = arith.constant 0 : index
    %22 = vector.load %arg5[%c0_10, %c0_11] : memref<1x128xf32, #tpu.memory_space<vmem>>, vector<1x128xf32>
    %23 = vector.broadcast %22 : vector<1x128xf32> to vector<24x128xf32>
    %24 = arith.addf %21, %23 : vector<24x128xf32>
    %c0_12 = arith.constant 0 : index
    %c0_13 = arith.constant 0 : index
    %25 = vector.load %arg6[%c0_12, %c0_13] : memref<24x128xf32, #tpu.memory_space<vmem>>, vector<24x128xf32>
    tpu.vector_store %arg6[%c0_12, %c0_13], %24 {strides = array<i32>} : memref<24x128xf32, #tpu.memory_space<vmem>>, vector<24x128xf32>,
    return
  }
  func.func @transform_0(%arg0: i32) -> (i32, i32) {
    %c0_i32 = arith.constant 0 : i32
    %c0_i32_0 = arith.constant 0 : i32
    return %arg0, %c0_i32 : i32, i32
  }
  func.func @transform_1(%arg0: i32) -> (i32, i32) {
    %c0_i32 = arith.constant 0 : i32
    %c0_i32_0 = arith.constant 0 : i32
    %c0_i32_1 = arith.constant 0 : i32
    return %c0_i32, %c0_i32_0 : i32, i32
  }
  func.func @transform_2(%arg0: i32) -> (i32, i32) {
    %c0_i32 = arith.constant 0 : i32
    %c0_i32_0 = arith.constant 0 : i32
    %c0_i32_1 = arith.constant 0 : i32
    return %c0_i32, %c0_i32_0 : i32, i32
  }
  func.func @transform_3(%arg0: i32) -> (i32, i32) {
    %c0_i32 = arith.constant 0 : i32
    %c0_i32_0 = arith.constant 0 : i32
    %c0_i32_1 = arith.constant 0 : i32
    return %c0_i32, %c0_i32_0 : i32, i32
  }
  func.func @transform_4(%arg0: i32) -> (i32, i32) {
    %c0_i32 = arith.constant 0 : i32
    %c0_i32_0 = arith.constant 0 : i32
    %c0_i32_1 = arith.constant 0 : i32
    return %c0_i32, %c0_i32_0 : i32, i32
  }
  func.func @transform_5(%arg0: i32) -> (i32, i32) {
    %c0_i32 = arith.constant 0 : i32
    %c0_i32_0 = arith.constant 0 : i32
    return %arg0, %c0_i32 : i32, i32
  }
}

</mosaic_0001>

<bundles_post_ra>
// kernel: enzyme_encoder_forward.1
= control target key start
LH: loop header
LB: loop body
LE: loop exit
PB: predicated region body
PF: predicated region fallthrough
CT: control target
= control target key end

     0   :  { %10 = vsyncpa [#allocation3], 0  ;;  %s331_s21 = smov [#allocation2]   ;;  %s332_s23 = smov 64   ;;  %s399_s0 = inlined_call_operand.vmem [shape: s32[24,1], index: 0, kind: input, shape index: {}]   ;;  %s400_s1 = inlined_call_operand.vmem [shape: bf16[32,128], index: 1, kind: input, shape index: {}]   ;;  %s401_s2 = inlined_call_operand.vmem [shape: f32[1,128], index: 2, kind: input, shape index: {}]   ;;  %s402_s3 = inlined_call_operand.hbm [shape: bf16[128,128], index: 3, kind: input, shape index: {}]   ;;  %s403_s4 = inlined_call_operand.vmem [shape: f32[1,128], index: 4, kind: input, shape index: {}]   ;;  %s404_s5 = inlined_call_operand.vmem [shape: f32[24,128], index: 5, kind: output, shape index: {}]  }
   0x1   :  { %s21_s20 = sshll.u32 %s402_s3, 4  ;;  %s23_s22 = sshll.u32 %s331_s21, 4  ;;  %s22_s20 = int_to_ptr.hbm [resolvable:$true] %s21_s20  ;;  %s24_s22 = int_to_ptr.vmem [resolvable:$true] %s23_s22 }
   0x2   :  { %s333_s24 = smov 4  }
   0x3   :  { %29 = dma.hbm_to_vmem [thread:$0]  %s22_s20, 1024, %s24_s22, [#allocation3], %s332_s23, %s332_s23, %s333_s24  }
   0x4   :  { %329 = dma.done.wait [#allocation3], 1024  }
   0x5   :  { %330 = vsyncadd [#allocation3], 4294966272  ;;  %v334_v0 = vmov 0   ;;  %v37_v1 = vld [vmem:[%s399_s0] sm:$0xff]  ;;  %v39_v2 = vld [vmem:[%s399_s0 + $0x10] sm:$0xff]  ;;  %v40_v6 = vlaneseq  ;;  %v335_v10 = vmov 0.0  }
   0x6   :  { %289 = vset.pattern.permute.xlu0 %v334_v0  ;;  %290 = vset.pattern.permute.xlu1 %v334_v0  ;;  %v38_v3 = vld [vmem:[%s399_s0 + $0x8] sm:$0xff]  ;;  %v266_v5 = vld [vmem:[%s400_s1] sm:$0xff]  ;;  %vm82_vm2 = vcmask 261120   ;;  %v275_v17 = vld [vmem:[#allocation2 + $0x38] sm:$0xff] }
   0x7   :  { %43 = vperm.xlu0 %289, %v37_v1   ;;  %49 = vperm.xlu1 %290, %v39_v2   ;;  %v267_v4 = vld [vmem:[%s400_s1 + $0x8] sm:$0xff]  ;;  %v41_v8 = vand.u32 127, %v40_v6  ;;  %v274_v18 = vld [vmem:[#allocation2 + $0x30] sm:$0xff]  ;;  %v272_v20 = vld [vmem:[#allocation2 + $0x20] sm:$0xff] }
   0x8   :  { %95 = vmatpush.bf16.msra.mxu0 %v267_v4  ;;  %195 = vmatpush.bf16.msra.mxu1 %v275_v17  ;;  %v273_v19 = vld [vmem:[#allocation2 + $0x28] sm:$0xff]  ;;  %v271_v21 = vld [vmem:[#allocation2 + $0x18] sm:$0xff]  ;;  %v270_v22 = vld [vmem:[#allocation2 + $0x10] sm:$0xff] }
   0x9   :  { %276 = vmatpush.bf16.msra.mxu2 %v275_v17  ;;  %v269_v23 = vld [vmem:[#allocation2 + $0x8] sm:$0xff]  ;;  %v291_v24 = vld [vmem:[%s401_s2] ss:$0 sm:$0xff] }
   0xa   :  { %v268_v25 = vld [vmem:[#allocation2] sm:$0xff] }
   0xb   :  { %v292_v53 = vld [vmem:[%s403_s4] ss:$0 sm:$0xff] }
   0xc   :  { %96 = vmatpush.bf16.msra.mxu0 %v266_v5  ;;  %196 = vmatpush.bf16.msra.mxu1 %v274_v18 }
   0xd   :  { %277 = vmatpush.bf16.msra.mxu2 %v274_v18 }
   0xf   :  { %46 = vperm.xlu0 %289, %v38_v3  }
  0x10   :  { %197 = vmatpush.bf16.msra.mxu1 %v273_v19 }
  0x11   :  { %278 = vmatpush.bf16.msra.mxu2 %v273_v19 }
  0x14   :  { %198 = vmatpush.bf16.msra.mxu1 %v272_v20 }
  0x15   :  { %279 = vmatpush.bf16.msra.mxu2 %v272_v20 }
  0x18   :  { %199 = vmatpush.bf16.msra.mxu1 %v271_v21 }
  0x19   :  { %280 = vmatpush.bf16.msra.mxu2 %v271_v21 }
  0x1c   :  { %200 = vmatpush.bf16.msra.mxu1 %v270_v22 }
  0x1d   :  { %281 = vmatpush.bf16.msra.mxu2 %v270_v22 }
  0x20   :  { %201 = vmatpush.bf16.msra.mxu1 %v269_v23 }
  0x21   :  { %282 = vmatpush.bf16.msra.mxu2 %v269_v23 }
  0x24   :  { %202 = vmatpush.bf16.msra.mxu1 %v268_v25 }
  0x25   :  { %283 = vmatpush.bf16.msra.mxu2 %v268_v25 }
  0x79   :  { %v44_v7 = vpop.permute.xlu0 %43  ;;  %v50_v14 = vpop.permute.xlu1 %49 }
  0x7a   :  { %vm51_vm0 = vcmp.eq.s32.totalorder %v44_v7, %v41_v8  ;;  %vm53_vm3 = vcmp.eq.s32.totalorder %v50_v14, %v41_v8 }
  0x7b   :  { %v221_v11 = vsel %vm51_vm0, 1.0, %v335_v10  ;;  %v223_v15 = vsel %vm53_vm3, 1.0, %v335_v10 }
  0x7c   :  { %v61_v16 = vpack.c.bf16 %v223_v15, %v223_v15 }
  0x81   :  { %v47_v9 = vpop.permute.xlu0 %46 }
  0x82   :  { %vm52_vm1 = vcmp.eq.s32.totalorder %v47_v9, %v41_v8 }
  0x83   :  { %v222_v12 = vsel %vm52_vm1, 1.0, %v335_v10 }
  0x84   :  { %v60_v13 = vpack.c.bf16 %v222_v12, %v221_v11 }
  0x86   :  { %232 = vmatmul.msk.bf16.vlgmr.msra.gmra.mxu0 %vm82_vm2, %v60_v13 }
  0x96   :  { %233 = vmatmul.msk.bf16.gmra.mxu0 %vm82_vm2, %v61_v16 }
 0x103   :  { %v98_v26 = vpop.f32.mrf.mxu0 }
 0x104   :  { %v99_v27 = vadd.f32 %v291_v24, %v98_v26 }
 0x106   :  { %v107_v28 = vsub.f32 0.0, %v99_v27 }
 0x108   :  { %v110_v29 = vmul.f32 1.442695, %v107_v28 }
 0x10a   :  { %293 = vpow2.f32 %v110_v29 }
 0x10b   :  { %v100_v30 = vpop.f32.mrf.mxu0 }
 0x10c   :  { %v101_v31 = vadd.f32 %v291_v24, %v100_v30 }
 0x10e   :  { %v108_v32 = vsub.f32 0.0, %v101_v31 }
 0x110   :  { %v112_v33 = vmul.f32 1.442695, %v108_v32  ;;  %v294_v34 = vpop.eup %293 }
 0x111   :  { %v116_v37 = vadd.f32 1.0, %v294_v34 }
 0x112   :  { %295 = vpow2.f32 %v112_v33 }
 0x113   :  { %v103_v35 = vpop.f32.mrf.mxu0  ;;  %297 = vrcp.f32 %v116_v37 }
 0x114   :  { %v104_v36 = vadd.f32 %v291_v24, %v103_v35 }
 0x116   :  { %v109_v38 = vsub.f32 0.0, %v104_v36 }
 0x118   :  { %v296_v39 = vpop.eup %295  ;;  %v114_v40 = vmul.f32 1.442695, %v109_v38 }
 0x119   :  { %v117_v41 = vadd.f32 1.0, %v296_v39  ;;  %v298_v43 = vpop.eup %297 }
 0x11a   :  { %299 = vpow2.f32 %v114_v40  ;;  %v122_v47 = vmul.f32 %v298_v43, %v99_v27 }
 0x11b   :  { %301 = vrcp.f32 %v117_v41  ;;  %v105_v42 = vpop.f32.mrf.mxu0 }
 0x120   :  { %v300_v44 = vpop.eup %299 }
 0x121   :  { %v302_v45 = vpop.eup %301  ;;  %v118_v46 = vadd.f32 1.0, %v300_v44 }
 0x122   :  { %v123_v48 = vmul.f32 %v302_v45, %v101_v31 }
 0x123   :  { %303 = vrcp.f32 %v118_v46 }
 0x124   :  { %v125_v49 = vpack.c.bf16 %v123_v48, %v122_v47 }
 0x126   :  { %203 = vmatmul.bf16.vlgmr.msra.gmra.mxu1 %v125_v49 }
 0x129   :  { %v304_v50 = vpop.eup %303 }
 0x12a   :  { %v124_v51 = vmul.f32 %v304_v50, %v104_v36 }
 0x12c   :  { %v126_v52 = vpack.c.bf16 %v124_v51, %v124_v51 }
 0x12e   :  { %208 = vmatmul.bf16.vlgmr.msra.gmra.mxu2 %v126_v52 }
 0x1a3   :  { %v204_v54 = vpop.f32.mrf.mxu1 }
 0x1a4   :  { %v205_v55 = vadd.f32 %v292_v53, %v204_v54 }
 0x1a6   :  { %213 = vst [vmem:[%s404_s5] sm:$0xff] %v205_v55 }
 0x1ab   :  { %v206_v56 = vpop.f32.mrf.mxu1 }
 0x1ac   :  { %v207_v57 = vadd.f32 %v292_v53, %v206_v56 }
 0x1ae   :  { %214 = vst [vmem:[%s404_s5 + $0x8] sm:$0xff] %v207_v57 }
 0x1b1   :  { %v209_v58 = vpop.f32.mrf.mxu2 }
 0x1b2   :  { %v210_v59 = vadd.f32 %v292_v53, %v209_v58 }
 0x1b4   :  { %215 = vst [vmem:[%s404_s5 + $0x10] sm:$0xff] %v210_v59 }
 0x1b9   :  { %v211_v60 = vpop.f32.mrf.mxu2 }
 0x1ba   :  { %220 = vsyncpa [#allocation3], 1 }

</bundles_post_ra>
